<compile_context>
chip_gen: v5e
topology: v5e:2x2
jax: 0.10.0
libtpu: 0.0.40
codegen_flags: <defaults>
</compile_context>

<pallas_src>
import jax
import jax.numpy as jnp
from jax.experimental import pallas as pl
from jax.experimental.pallas import tpu as pltpu


def _round_up(x, m):
    return (x + m - 1) // m * m


def _vmem_capacity_bytes():
    """Per-core VMEM capacity; conservative fallback if the query fails."""
    try:
        cap = int(getattr(pltpu.get_tpu_info(), "vmem_capacity_bytes", 0))
        if cap > 0:
            return cap
    except Exception:
        pass
    return 64 * 1024 * 1024  # v7x per-TensorCore VMEM (smallest generation)


def _choose_tm(n_rows, vp, resident_table_bytes, vmem_cap):
    """Rows per grid step, sized from the padded vocab width and VMEM budget.

    Budget covers the double-buffered [tm, vp] f32 output block plus roughly
    two [tm, vp] f32 CE intermediates, leaving headroom for compiler scratch.
    """
    block_budget = int(0.55 * vmem_cap) - 2 * resident_table_bytes
    per_row_bytes = 16 * vp                       # (2 out bufs + 2 temps) * 4B
    tm = max(block_budget // per_row_bytes, 8)
    tm = min(tm, 256)                             # bound the unrolled gather
    tm = min(tm, _round_up(max(n_rows, 1), 8))    # don't overshoot tiny inputs
    return max(8, (tm // 8) * 8)


def _ce_partial(logits, tgt_col, base, tm, vp, n_valid, inv_n):
    """Per-block partial of mean cross-entropy (already scaled by 1/N)."""
    m = jnp.max(logits, axis=-1, keepdims=True)                    # [tm, 1]
    lse = m + jnp.log(jnp.sum(jnp.exp(logits - m), axis=-1, keepdims=True))
    col = jax.lax.broadcasted_iota(jnp.int32, (tm, vp), 1)
    tgt_logit = jnp.sum(jnp.where(col == tgt_col, logits, 0.0),
                        axis=-1, keepdims=True)                    # [tm, 1]
    per_row = lse - tgt_logit
    row = base + jax.lax.broadcasted_iota(jnp.int32, (tm, 1), 0)
    per_row = jnp.where(row < n_valid, per_row, 0.0)               # mask pad
    return jnp.sum(per_row, axis=0, keepdims=True) * inv_n         # [1, 1]


# ----------------------------- VMEM-resident table -----------------------------

def _make_vmem_gather_kernel(tm):
    def kernel(idx_ref, table_ref, out_ref):
        # idx_ref:   SMEM [Np]     int32 (scalar prefetch)
        # table_ref: VMEM [V, vp]  f32   (constant block -> one HBM read total)
        # out_ref:   VMEM [tm, vp] f32
        base = pl.program_id(0) * tm
        for r in range(tm):
            i = idx_ref[base + r]
            out_ref[pl.ds(r, 1), :] = table_ref[pl.ds(i, 1), :]
    return kernel


def _make_vmem_gather_ce_kernel(tm, vp, n_valid):
    inv_n = 1.0 / float(n_valid)

    def kernel(idx_ref, tgt_ref, table_ref, out_ref, loss_ref):
        base = pl.program_id(0) * tm
        for r in range(tm):
            i = idx_ref[base + r]
            out_ref[pl.ds(r, 1), :] = table_ref[pl.ds(i, 1), :]
        loss_ref[...] = _ce_partial(out_ref[...], tgt_ref[...], base,
                                    tm, vp, n_valid, inv_n)
    return kernel


# ----------------------------- HBM table (huge vocab) -----------------------------

def _make_hbm_gather_kernel(tm):
    def kernel(idx_ref, table_ref, out_ref, sem):
        base = pl.program_id(0) * tm
        copies = []
        for r in range(tm):
            cp = pltpu.make_async_copy(
                table_ref.at[idx_ref[base + r]], out_ref.at[r], sem.at[0])
            cp.start()
            copies.append(cp)
        for cp in copies:
            cp.wait()
    return kernel


def _make_hbm_gather_ce_kernel(tm, vp, n_valid):
    inv_n = 1.0 / float(n_valid)

    def kernel(idx_ref, tgt_ref, table_ref, out_ref, loss_ref, sem):
        base = pl.program_id(0) * tm
        copies = []
        for r in range(tm):
            cp = pltpu.make_async_copy(
                table_ref.at[idx_ref[base + r]], out_ref.at[r], sem.at[0])
            cp.start()
            copies.append(cp)
        for cp in copies:
            cp.wait()
        # TODO(synk): manually double-buffer the row gather in a (2, tm, vp)
        # VMEM scratch so block b+1's DMAs overlap block b's exp/logsumexp
        # (only relevant on this huge-vocab HBM fallback path).
        loss_ref[...] = _ce_partial(out_ref[...], tgt_ref[...], base,
                                    tm, vp, n_valid, inv_n)
    return kernel


# ----------------------------- wrapper -----------------------------

def bigram_forward(idx, table, predictions=None):
    """Mirror of BigramLLM.forward.

    idx:         int32 [B, T]
    table:       float32 [V, V]   (nn.Embedding weight)
    predictions: optional int32 [B, T]
    returns (llm_predictions, loss)
    """
    B, T = idx.shape
    V = table.shape[0]
    N = B * T

    cap = _vmem_capacity_bytes()

    # Lane-dense vocab width; skip padding entirely when V % 128 == 0 so the
    # wrapper-side column slice becomes a no-op.
    vp = V if (V % 128 == 0) else _round_up(max(V, 128), 128)
    table_p = table.astype(jnp.float32)
    if vp != V:
        # -1e30 padding never wins the max and exp() underflows to 0.
        table_p = jnp.pad(table_p, ((0, 0), (0, vp - V)),
                          constant_values=-1e30)

    table_bytes = V * vp * 4
    # Small/medium tables: keep the table VMEM-resident (read from HBM once)
    # and gather with in-kernel loads instead of per-row DMA descriptors.
    use_vmem_table = 2 * table_bytes <= cap // 4

    tm = _choose_tm(N, vp, table_bytes if use_vmem_table else 0, cap)
    n_pad = _round_up(N, tm)
    num_blocks = n_pad // tm

    idx_flat = jnp.pad(idx.reshape(N).astype(jnp.int32), (0, n_pad - N))

    cparams = pltpu.CompilerParams(
        dimension_semantics=("parallel",),
        vmem_limit_bytes=min(int(0.85 * cap), 100 * 1024 * 1024))

    if use_vmem_table:
        table_spec = pl.BlockSpec((V, vp), lambda b, idx_ref: (0, 0))
        dma_scratch = []
    else:
        table_spec = pl.BlockSpec(memory_space=pl.ANY)
        dma_scratch = [pltpu.SemaphoreType.DMA((1,))]

    hbm_bytes = (table_bytes if use_vmem_table else n_pad * vp * 4) + n_pad * vp * 4

    if predictions is None:
        kernel = (_make_vmem_gather_kernel(tm) if use_vmem_table
                  else _make_hbm_gather_kernel(tm))
        grid_spec = pltpu.PrefetchScalarGridSpec(
            num_scalar_prefetch=1,
            grid=(num_blocks,),
            in_specs=[table_spec],
            out_specs=pl.BlockSpec((tm, vp), lambda b, idx_ref: (b, 0)),
            scratch_shapes=dma_scratch,
        )
        logits_p = pl.pallas_call(
            kernel,
            out_shape=jax.ShapeDtypeStruct((n_pad, vp), jnp.float32),
            grid_spec=grid_spec,
            compiler_params=cparams,
            cost_estimate=pl.CostEstimate(
                flops=0, transcendentals=0, bytes_accessed=hbm_bytes),
        )(idx_flat, table_p)
        logits = logits_p if (n_pad == N and vp == V) else logits_p[:N, :V]
        return logits.reshape(B, T, V), None

    tgt_flat = jnp.pad(predictions.reshape(N).astype(jnp.int32),
                       (0, n_pad - N)).reshape(n_pad, 1)
    kernel = (_make_vmem_gather_ce_kernel(tm, vp, N) if use_vmem_table
              else _make_hbm_gather_ce_kernel(tm, vp, N))
    grid_spec = pltpu.PrefetchScalarGridSpec(
        num_scalar_prefetch=1,
        grid=(num_blocks,),
        in_specs=[pl.BlockSpec((tm, 1), lambda b, idx_ref: (b, 0)),  # targets
                  table_spec],
        out_specs=(pl.BlockSpec((tm, vp), lambda b, idx_ref: (b, 0)),
                   pl.BlockSpec((1, 1), lambda b, idx_ref: (b, 0))),  # partials
        scratch_shapes=dma_scratch,
    )
    logits_p, loss_parts = pl.pallas_call(
        kernel,
        out_shape=(jax.ShapeDtypeStruct((n_pad, vp), jnp.float32),
                   jax.ShapeDtypeStruct((num_blocks, 1), jnp.float32)),
        grid_spec=grid_spec,
        compiler_params=cparams,
        cost_estimate=pl.CostEstimate(
            flops=6 * n_pad * vp, transcendentals=n_pad * vp,
            bytes_accessed=hbm_bytes),
    )(idx_flat, tgt_flat, table_p)
    loss = jnp.sum(loss_parts)            # partials are already scaled by 1/N
    # PyTorch returns llm_predictions already viewed as (B*T, C) in this branch.
    logits = logits_p if (n_pad == N and vp == V) else logits_p[:N, :V]
    return logits, loss


def _reference_forward(idx, table, predictions=None):
    logits = table[idx]                                           # [B, T, V]
    if predictions is None:
        return logits, None
    B, T, V = logits.shape
    lg = logits.reshape(B * T, V)
    tg = predictions.reshape(B * T)
    lse = jax.scipy.special.logsumexp(lg, axis=-1)
    loss = jnp.mean(lse - lg[jnp.arange(B * T), tg])
    return lg, loss


if __name__ == "__main__":
    B, T, V = 2, 8, 32  # small shapes: batch=2, seq=8, vocab_size=32
    key = jax.random.PRNGKey(0)
    k_tab, k_idx, k_tgt = jax.random.split(key, 3)

    # nn.Embedding(vocab_size, vocab_size) initializes weights ~ N(0, 1)
    table = jax.random.normal(k_tab, (V, V), dtype=jnp.float32)
    idx = jax.random.randint(k_idx, (B, T), 0, V, dtype=jnp.int32)
    targets = jax.random.randint(k_tgt, (B, T), 0, V, dtype=jnp.int32)

    # Mode 1: no targets -> (logits [B, T, V], None)
    logits_no_tgt, loss_none = bigram_forward(idx, table, None)
    jax.block_until_ready(logits_no_tgt)
    assert loss_none is None
    assert logits_no_tgt.shape == (B, T, V)

    # Mode 2: with targets -> (logits [B*T, V], scalar loss)
    logits_tgt, loss = bigram_forward(idx, table, targets)
    jax.block_until_ready((logits_tgt, loss))
    assert logits_tgt.shape == (B * T, V)

    # Correctness check vs pure-JAX reference.
    ref_logits, _ = _reference_forward(idx, table, None)
    ref_flat, ref_loss = _reference_forward(idx, table, targets)
    assert jnp.allclose(logits_no_tgt, ref_logits, atol=1e-5)
    assert jnp.allclose(logits_tgt, ref_flat, atol=1e-5)
    assert jnp.allclose(loss, ref_loss, atol=1e-4)

    print("KERNEL_OK")
</pallas_src>

<mosaic_0001>
module attributes {stable_mosaic.version = 11 : i64} {
  func.func @kernel(%arg0: i32, %arg1: memref<16xi32, #tpu.memory_space<smem>>, %arg2: memref<32x128xf32, #tpu.memory_space<vmem>>, %arg3: memref<16x128xf32, #tpu.memory_space<vmem>>) attributes {dimension_semantics = [#tpu.dimension_semantics<parallel>], iteration_bounds = array<i64: 1>, scalar_prefetch = 1 : i64, scratch_operands = 0 : i64, tpu.core_type = #tpu.core_type<tc>, window_params = [{pipeline_mode = #tpu.pipeline_mode<synchronous>, transform_indices = @transform_0, window_bounds = array<i64: 32, 128>}, {transform_indices = @transform_1, window_bounds = array<i64: 16, 128>}]} {
    %c16_i32 = arith.constant 16 : i32
    %0 = arith.muli %arg0, %c16_i32 : i32
    %c0_i32 = arith.constant 0 : i32
    %1 = arith.addi %0, %c0_i32 : i32
    %2 = arith.index_cast %1 : i32 to index
    %3 = memref.load %arg1[%2] : memref<16xi32, #tpu.memory_space<smem>>
    %4 = arith.index_cast %3 : i32 to index
    %c0 = arith.constant 0 : index
    %5 = vector.load %arg2[%4, %c0] : memref<32x128xf32, #tpu.memory_space<vmem>>, vector<1x128xf32>
    %c0_0 = arith.constant 0 : index
    %c0_1 = arith.constant 0 : index
    %6 = vector.load %arg3[%c0_0, %c0_1] : memref<16x128xf32, #tpu.memory_space<vmem>>, vector<1x128xf32>
    tpu.vector_store %arg3[%c0_0, %c0_1], %5 {strides = array<i32>} : memref<16x128xf32, #tpu.memory_space<vmem>>, vector<1x128xf32>,
    %c1_i32 = arith.constant 1 : i32
    %7 = arith.addi %0, %c1_i32 : i32
    %8 = arith.index_cast %7 : i32 to index
    %9 = memref.load %arg1[%8] : memref<16xi32, #tpu.memory_space<smem>>
    %10 = arith.index_cast %9 : i32 to index
    %c0_2 = arith.constant 0 : index
    %11 = vector.load %arg2[%10, %c0_2] : memref<32x128xf32, #tpu.memory_space<vmem>>, vector<1x128xf32>
    %c1 = arith.constant 1 : index
    %c0_3 = arith.constant 0 : index
    %12 = vector.load %arg3[%c1, %c0_3] : memref<16x128xf32, #tpu.memory_space<vmem>>, vector<1x128xf32>
    tpu.vector_store %arg3[%c1, %c0_3], %11 {strides = array<i32>} : memref<16x128xf32, #tpu.memory_space<vmem>>, vector<1x128xf32>,
    %c2_i32 = arith.constant 2 : i32
    %13 = arith.addi %0, %c2_i32 : i32
    %14 = arith.index_cast %13 : i32 to index
    %15 = memref.load %arg1[%14] : memref<16xi32, #tpu.memory_space<smem>>
    %16 = arith.index_cast %15 : i32 to index
    %c0_4 = arith.constant 0 : index
    %17 = vector.load %arg2[%16, %c0_4] : memref<32x128xf32, #tpu.memory_space<vmem>>, vector<1x128xf32>
    %c2 = arith.constant 2 : index
    %c0_5 = arith.constant 0 : index
    %18 = vector.load %arg3[%c2, %c0_5] : memref<16x128xf32, #tpu.memory_space<vmem>>, vector<1x128xf32>
    tpu.vector_store %arg3[%c2, %c0_5], %17 {strides = array<i32>} : memref<16x128xf32, #tpu.memory_space<vmem>>, vector<1x128xf32>,
    %c3_i32 = arith.constant 3 : i32
    %19 = arith.addi %0, %c3_i32 : i32
    %20 = arith.index_cast %19 : i32 to index
    %21 = memref.load %arg1[%20] : memref<16xi32, #tpu.memory_space<smem>>
    %22 = arith.index_cast %21 : i32 to index
    %c0_6 = arith.constant 0 : index
    %23 = vector.load %arg2[%22, %c0_6] : memref<32x128xf32, #tpu.memory_space<vmem>>, vector<1x128xf32>
    %c3 = arith.constant 3 : index
    %c0_7 = arith.constant 0 : index
    %24 = vector.load %arg3[%c3, %c0_7] : memref<16x128xf32, #tpu.memory_space<vmem>>, vector<1x128xf32>
    tpu.vector_store %arg3[%c3, %c0_7], %23 {strides = array<i32>} : memref<16x128xf32, #tpu.memory_space<vmem>>, vector<1x128xf32>,
    %c4_i32 = arith.constant 4 : i32
    %25 = arith.addi %0, %c4_i32 : i32
    %26 = arith.index_cast %25 : i32 to index
    %27 = memref.load %arg1[%26] : memref<16xi32, #tpu.memory_space<smem>>
    %28 = arith.index_cast %27 : i32 to index
    %c0_8 = arith.constant 0 : index
    %29 = vector.load %arg2[%28, %c0_8] : memref<32x128xf32, #tpu.memory_space<vmem>>, vector<1x128xf32>
    %c4 = arith.constant 4 : index
    %c0_9 = arith.constant 0 : index
    %30 = vector.load %arg3[%c4, %c0_9] : memref<16x128xf32, #tpu.memory_space<vmem>>, vector<1x128xf32>
    tpu.vector_store %arg3[%c4, %c0_9], %29 {strides = array<i32>} : memref<16x128xf32, #tpu.memory_space<vmem>>, vector<1x128xf32>,
    %c5_i32 = arith.constant 5 : i32
    %31 = arith.addi %0, %c5_i32 : i32
    %32 = arith.index_cast %31 : i32 to index
    %33 = memref.load %arg1[%32] : memref<16xi32, #tpu.memory_space<smem>>
    %34 = arith.index_cast %33 : i32 to index
    %c0_10 = arith.constant 0 : index
    %35 = vector.load %arg2[%34, %c0_10] : memref<32x128xf32, #tpu.memory_space<vmem>>, vector<1x128xf32>
    %c5 = arith.constant 5 : index
    %c0_11 = arith.constant 0 : index
    %36 = vector.load %arg3[%c5, %c0_11] : memref<16x128xf32, #tpu.memory_space<vmem>>, vector<1x128xf32>
    tpu.vector_store %arg3[%c5, %c0_11], %35 {strides = array<i32>} : memref<16x128xf32, #tpu.memory_space<vmem>>, vector<1x128xf32>,
    %c6_i32 = arith.constant 6 : i32
    %37 = arith.addi %0, %c6_i32 : i32
    %38 = arith.index_cast %37 : i32 to index
    %39 = memref.load %arg1[%38] : memref<16xi32, #tpu.memory_space<smem>>
    %40 = arith.index_cast %39 : i32 to index
    %c0_12 = arith.constant 0 : index
    %41 = vector.load %arg2[%40, %c0_12] : memref<32x128xf32, #tpu.memory_space<vmem>>, vector<1x128xf32>
    %c6 = arith.constant 6 : index
    %c0_13 = arith.constant 0 : index
    %42 = vector.load %arg3[%c6, %c0_13] : memref<16x128xf32, #tpu.memory_space<vmem>>, vector<1x128xf32>
    tpu.vector_store %arg3[%c6, %c0_13], %41 {strides = array<i32>} : memref<16x128xf32, #tpu.memory_space<vmem>>, vector<1x128xf32>,
    %c7_i32 = arith.constant 7 : i32
    %43 = arith.addi %0, %c7_i32 : i32
    %44 = arith.index_cast %43 : i32 to index
    %45 = memref.load %arg1[%44] : memref<16xi32, #tpu.memory_space<smem>>
    %46 = arith.index_cast %45 : i32 to index
    %c0_14 = arith.constant 0 : index
    %47 = vector.load %arg2[%46, %c0_14] : memref<32x128xf32, #tpu.memory_space<vmem>>, vector<1x128xf32>
    %c7 = arith.constant 7 : index
    %c0_15 = arith.constant 0 : index
    %48 = vector.load %arg3[%c7, %c0_15] : memref<16x128xf32, #tpu.memory_space<vmem>>, vector<1x128xf32>
    tpu.vector_store %arg3[%c7, %c0_15], %47 {strides = array<i32>} : memref<16x128xf32, #tpu.memory_space<vmem>>, vector<1x128xf32>,
    %c8_i32 = arith.constant 8 : i32
    %49 = arith.addi %0, %c8_i32 : i32
    %50 = arith.index_cast %49 : i32 to index
    %51 = memref.load %arg1[%50] : memref<16xi32, #tpu.memory_space<smem>>
    %52 = arith.index_cast %51 : i32 to index
    %c0_16 = arith.constant 0 : index
    %53 = vector.load %arg2[%52, %c0_16] : memref<32x128xf32, #tpu.memory_space<vmem>>, vector<1x128xf32>
    %c8 = arith.constant 8 : index
    %c0_17 = arith.constant 0 : index
    %54 = vector.load %arg3[%c8, %c0_17] : memref<16x128xf32, #tpu.memory_space<vmem>>, vector<1x128xf32>
    tpu.vector_store %arg3[%c8, %c0_17], %53 {strides = array<i32>} : memref<16x128xf32, #tpu.memory_space<vmem>>, vector<1x128xf32>,
    %c9_i32 = arith.constant 9 : i32
    %55 = arith.addi %0, %c9_i32 : i32
    %56 = arith.index_cast %55 : i32 to index
    %57 = memref.load %arg1[%56] : memref<16xi32, #tpu.memory_space<smem>>
    %58 = arith.index_cast %57 : i32 to index
    %c0_18 = arith.constant 0 : index
    %59 = vector.load %arg2[%58, %c0_18] : memref<32x128xf32, #tpu.memory_space<vmem>>, vector<1x128xf32>
    %c9 = arith.constant 9 : index
    %c0_19 = arith.constant 0 : index
    %60 = vector.load %arg3[%c9, %c0_19] : memref<16x128xf32, #tpu.memory_space<vmem>>, vector<1x128xf32>
    tpu.vector_store %arg3[%c9, %c0_19], %59 {strides = array<i32>} : memref<16x128xf32, #tpu.memory_space<vmem>>, vector<1x128xf32>,
    %c10_i32 = arith.constant 10 : i32
    %61 = arith.addi %0, %c10_i32 : i32
    %62 = arith.index_cast %61 : i32 to index
    %63 = memref.load %arg1[%62] : memref<16xi32, #tpu.memory_space<smem>>
    %64 = arith.index_cast %63 : i32 to index
    %c0_20 = arith.constant 0 : index
    %65 = vector.load %arg2[%64, %c0_20] : memref<32x128xf32, #tpu.memory_space<vmem>>, vector<1x128xf32>
    %c10 = arith.constant 10 : index
    %c0_21 = arith.constant 0 : index
    %66 = vector.load %arg3[%c10, %c0_21] : memref<16x128xf32, #tpu.memory_space<vmem>>, vector<1x128xf32>
    tpu.vector_store %arg3[%c10, %c0_21], %65 {strides = array<i32>} : memref<16x128xf32, #tpu.memory_space<vmem>>, vector<1x128xf32>,
    %c11_i32 = arith.constant 11 : i32
    %67 = arith.addi %0, %c11_i32 : i32
    %68 = arith.index_cast %67 : i32 to index
    %69 = memref.load %arg1[%68] : memref<16xi32, #tpu.memory_space<smem>>
    %70 = arith.index_cast %69 : i32 to index
    %c0_22 = arith.constant 0 : index
    %71 = vector.load %arg2[%70, %c0_22] : memref<32x128xf32, #tpu.memory_space<vmem>>, vector<1x128xf32>
    %c11 = arith.constant 11 : index
    %c0_23 = arith.constant 0 : index
    %72 = vector.load %arg3[%c11, %c0_23] : memref<16x128xf32, #tpu.memory_space<vmem>>, vector<1x128xf32>
    tpu.vector_store %arg3[%c11, %c0_23], %71 {strides = array<i32>} : memref<16x128xf32, #tpu.memory_space<vmem>>, vector<1x128xf32>,
    %c12_i32 = arith.constant 12 : i32
    %73 = arith.addi %0, %c12_i32 : i32
    %74 = arith.index_cast %73 : i32 to index
    %75 = memref.load %arg1[%74] : memref<16xi32, #tpu.memory_space<smem>>
    %76 = arith.index_cast %75 : i32 to index
    %c0_24 = arith.constant 0 : index
    %77 = vector.load %arg2[%76, %c0_24] : memref<32x128xf32, #tpu.memory_space<vmem>>, vector<1x128xf32>
    %c12 = arith.constant 12 : index
    %c0_25 = arith.constant 0 : index
    %78 = vector.load %arg3[%c12, %c0_25] : memref<16x128xf32, #tpu.memory_space<vmem>>, vector<1x128xf32>
    tpu.vector_store %arg3[%c12, %c0_25], %77 {strides = array<i32>} : memref<16x128xf32, #tpu.memory_space<vmem>>, vector<1x128xf32>,
    %c13_i32 = arith.constant 13 : i32
    %79 = arith.addi %0, %c13_i32 : i32
    %80 = arith.index_cast %79 : i32 to index
    %81 = memref.load %arg1[%80] : memref<16xi32, #tpu.memory_space<smem>>
    %82 = arith.index_cast %81 : i32 to index
    %c0_26 = arith.constant 0 : index
    %83 = vector.load %arg2[%82, %c0_26] : memref<32x128xf32, #tpu.memory_space<vmem>>, vector<1x128xf32>
    %c13 = arith.constant 13 : index
    %c0_27 = arith.constant 0 : index
    %84 = vector.load %arg3[%c13, %c0_27] : memref<16x128xf32, #tpu.memory_space<vmem>>, vector<1x128xf32>
    tpu.vector_store %arg3[%c13, %c0_27], %83 {strides = array<i32>} : memref<16x128xf32, #tpu.memory_space<vmem>>, vector<1x128xf32>,
    %c14_i32 = arith.constant 14 : i32
    %85 = arith.addi %0, %c14_i32 : i32
    %86 = arith.index_cast %85 : i32 to index
    %87 = memref.load %arg1[%86] : memref<16xi32, #tpu.memory_space<smem>>
    %88 = arith.index_cast %87 : i32 to index
    %c0_28 = arith.constant 0 : index
    %89 = vector.load %arg2[%88, %c0_28] : memref<32x128xf32, #tpu.memory_space<vmem>>, vector<1x128xf32>
    %c14 = arith.constant 14 : index
    %c0_29 = arith.constant 0 : index
    %90 = vector.load %arg3[%c14, %c0_29] : memref<16x128xf32, #tpu.memory_space<vmem>>, vector<1x128xf32>
    tpu.vector_store %arg3[%c14, %c0_29], %89 {strides = array<i32>} : memref<16x128xf32, #tpu.memory_space<vmem>>, vector<1x128xf32>,
    %c15_i32 = arith.constant 15 : i32
    %91 = arith.addi %0, %c15_i32 : i32
    %92 = arith.index_cast %91 : i32 to index
    %93 = memref.load %arg1[%92] : memref<16xi32, #tpu.memory_space<smem>>
    %94 = arith.index_cast %93 : i32 to index
    %c0_30 = arith.constant 0 : index
    %95 = vector.load %arg2[%94, %c0_30] : memref<32x128xf32, #tpu.memory_space<vmem>>, vector<1x128xf32>
    %c15 = arith.constant 15 : index
    %c0_31 = arith.constant 0 : index
    %96 = vector.load %arg3[%c15, %c0_31] : memref<16x128xf32, #tpu.memory_space<vmem>>, vector<1x128xf32>
    tpu.vector_store %arg3[%c15, %c0_31], %95 {strides = array<i32>} : memref<16x128xf32, #tpu.memory_space<vmem>>, vector<1x128xf32>,
    return
  }
  func.func @transform_0(%arg0: i32, %arg1: memref<16xi32, #tpu.memory_space<smem>>) -> (i32, i32) {
    %c0_i32 = arith.constant 0 : i32
    %c0_i32_0 = arith.constant 0 : i32
    %c0_i32_1 = arith.constant 0 : i32
    return %c0_i32, %c0_i32_0 : i32, i32
  }
  func.func @transform_1(%arg0: i32, %arg1: memref<16xi32, #tpu.memory_space<smem>>) -> (i32, i32) {
    %c0_i32 = arith.constant 0 : i32
    %c0_i32_0 = arith.constant 0 : i32
    return %arg0, %c0_i32 : i32, i32
  }
}

</mosaic_0001>

<bundles_post_ra>
// kernel: tpu_custom_call.1
= control target key start
LH: loop header
LB: loop body
LE: loop exit
PB: predicated region body
PF: predicated region fallthrough
CT: control target
= control target key end

     0   :  { %s235_s12 = smov [#allocation3]   ;;  %s270_s0 = inlined_call_operand.hbm [shape: s32[16], index: 0, kind: input, shape index: {}]   ;;  %s271_s1 = inlined_call_operand.hbm [shape: f32[32,128], index: 1, kind: input, shape index: {}]   ;;  %s272_s2 = inlined_call_operand.hbm [shape: f32[16,128], index: 2, kind: output, shape index: {}]  }
   0x1   :  { %s8_s11 = sshll.u32 %s270_s0, 4  ;;  %s9_s11 = int_to_ptr.hbm [resolvable:$true] %s8_s11 }
   0x2   :  { %11 = dma.hbm_to_smem %s9_s11, 16, %s235_s12, [#allocation2] }
   0x3   :  { %229 = dma.done.wait [#allocation2], 16 }
   0x4   :  { %230 = vsyncadd [#allocation2], 4294967280 }
   0x5   :  { %14 = sfence }
   0x6   :  { %15 = vsyncpa [#allocation5], 0 }
   0x7   :  { %16 = vsyncpa [#allocation6], 0  ;;  %s21_s15 = sshll.u32 %s271_s1, 4  ;;  %s236_s16 = smov [#allocation4]   ;;  %s22_s15 = int_to_ptr.hbm [resolvable:$true] %s21_s15 }
   0x8   :  { %s23_s17 = sshll.u32 %s236_s16, 4  ;;  %s237_s18 = smov 128   ;;  %s24_s17 = int_to_ptr.vmem [resolvable:$true] %s23_s17 }
   0x9   :  { %s238_s19 = smov 8  }
   0xa   :  { %29 = dma.hbm_to_vmem [thread:$0]  %s22_s15, 512, %s24_s17, [#allocation5], %s237_s18, %s237_s18, %s238_s19  }
   0xb   :  { %231 = dma.done.wait [#allocation5], 512  }
   0xc   :  { %232 = vsyncadd [#allocation5], 4294966784  ;;  %s35_s0 = sld [smem:[#allocation3]]  ;;  %s239_s17 = smov [#allocation7]  }
   0xd   :  { %s149_s20 = sld [smem:[#allocation3 + $0x1]] }
   0xe   :  { %s150_s21 = sld [smem:[#allocation3 + $0x2]] }
   0xf   :  { %s151_s22 = sld [smem:[#allocation3 + $0x3]] }
  0x10   :  { %s152_s23 = sld [smem:[#allocation3 + $0x4]] }
  0x11   :  { %s153_s24 = sld [smem:[#allocation3 + $0x5]] }
  0x12   :  { %s154_s25 = sld [smem:[#allocation3 + $0x6]]  ;;  %s36_s1 = scalar_lea.vmem [#allocation4], %s35_s0 }
  0x13   :  { %v37_v0 = vld [vmem:[%s36_s1] sm:$0x1]  ;;  %s155_s26 = sld [smem:[#allocation3 + $0x7]]  ;;  %s41_s27 = scalar_lea.vmem [#allocation4], %s149_s20 }
  0x14   :  { %38 = vst [vmem:[#allocation7] sm:$0x1] %v37_v0  ;;  %v42_v1 = vld [vmem:[%s41_s27] sm:$0x1]  ;;  %s46_s28 = scalar_lea.vmem [#allocation4], %s150_s21  ;;  %s156_s6 = sld [smem:[#allocation3 + $0x8]] }
  0x15   :  { %43 = vst [vmem:[#allocation7 + $0x1] sm:$0x1] %v42_v1  ;;  %v47_v2 = vld [vmem:[%s46_s28] sm:$0x1]  ;;  %s51_s29 = scalar_lea.vmem [#allocation4], %s151_s22  ;;  %s157_s7 = sld [smem:[#allocation3 + $0x9]] }
  0x16   :  { %48 = vst [vmem:[#allocation7 + $0x2] sm:$0x1] %v47_v2  ;;  %v52_v3 = vld [vmem:[%s51_s29] sm:$0x1]  ;;  %s56_s30 = scalar_lea.vmem [#allocation4], %s152_s23  ;;  %s158_s8 = sld [smem:[#allocation3 + $0xa]] }
  0x17   :  { %53 = vst [vmem:[#allocation7 + $0x3] sm:$0x1] %v52_v3  ;;  %v57_v4 = vld [vmem:[%s56_s30] sm:$0x1]  ;;  %s61_s3 = scalar_lea.vmem [#allocation4], %s153_s24  ;;  %s159_s9 = sld [smem:[#allocation3 + $0xb]] }
  0x18   :  { %58 = vst [vmem:[#allocation7 + $0x4] sm:$0x1] %v57_v4  ;;  %v62_v5 = vld [vmem:[%s61_s3] sm:$0x1]  ;;  %s66_s4 = scalar_lea.vmem [#allocation4], %s154_s25  ;;  %s160_s10 = sld [smem:[#allocation3 + $0xc]] }
  0x19   :  { %63 = vst [vmem:[#allocation7 + $0x5] sm:$0x1] %v62_v5  ;;  %v67_v6 = vld [vmem:[%s66_s4] sm:$0x1]  ;;  %s71_s5 = scalar_lea.vmem [#allocation4], %s155_s26  ;;  %s161_s11 = sld [smem:[#allocation3 + $0xd]] }
  0x1a   :  { %68 = vst [vmem:[#allocation7 + $0x6] sm:$0x1] %v67_v6  ;;  %v72_v7 = vld [vmem:[%s71_s5] sm:$0x1]  ;;  %s162_s12 = sld [smem:[#allocation3 + $0xe]]  ;;  %s76_s13 = scalar_lea.vmem [#allocation4], %s156_s6 }
  0x1b   :  { %73 = vst [vmem:[#allocation7 + $0x7] sm:$0x1] %v72_v7  ;;  %v77_v8 = vld [vmem:[%s76_s13] sm:$0x1]  ;;  %s163_s14 = sld [smem:[#allocation3 + $0xf]]  ;;  %s81_s15 = scalar_lea.vmem [#allocation4], %s157_s7 }
  0x1c   :  { %78 = vst [vmem:[#allocation7 + $0x8] sm:$0x1] %v77_v8  ;;  %v82_v9 = vld [vmem:[%s81_s15] sm:$0x1]  ;;  %s86_s16 = scalar_lea.vmem [#allocation4], %s158_s8  ;;  %s118_s0 = sshll.u32 %s239_s17, 4  ;;  %s119_s0 = int_to_ptr.vmem [resolvable:$true] %s118_s0 }
  0x1d   :  { %83 = vst [vmem:[#allocation7 + $0x9] sm:$0x1] %v82_v9  ;;  %v87_v10 = vld [vmem:[%s86_s16] sm:$0x1]  ;;  %s91_s20 = scalar_lea.vmem [#allocation4], %s159_s9  ;;  %s120_s23 = sshll.u32 %s272_s2, 4  ;;  %s121_s23 = int_to_ptr.hbm [resolvable:$true] %s120_s23 }
  0x1e   :  { %88 = vst [vmem:[#allocation7 + $0xa] sm:$0x1] %v87_v10  ;;  %v92_v11 = vld [vmem:[%s91_s20] sm:$0x1]  ;;  %s96_s24 = scalar_lea.vmem [#allocation4], %s160_s10 }
  0x1f   :  { %93 = vst [vmem:[#allocation7 + $0xb] sm:$0x1] %v92_v11  ;;  %v97_v12 = vld [vmem:[%s96_s24] sm:$0x1]  ;;  %s101_s25 = scalar_lea.vmem [#allocation4], %s161_s11 }
  0x20   :  { %98 = vst [vmem:[#allocation7 + $0xc] sm:$0x1] %v97_v12  ;;  %v102_v13 = vld [vmem:[%s101_s25] sm:$0x1]  ;;  %s106_s1 = scalar_lea.vmem [#allocation4], %s162_s12 }
  0x21   :  { %103 = vst [vmem:[#allocation7 + $0xd] sm:$0x1] %v102_v13  ;;  %v107_v14 = vld [vmem:[%s106_s1] sm:$0x1]  ;;  %s111_s26 = scalar_lea.vmem [#allocation4], %s163_s14 }
  0x22   :  { %108 = vst [vmem:[#allocation7 + $0xe] sm:$0x1] %v107_v14  ;;  %v112_v15 = vld [vmem:[%s111_s26] sm:$0x1] }
  0x23   :  { %113 = vst [vmem:[#allocation7 + $0xf] sm:$0x1] %v112_v15 }
  0x24   :  { %126 = dma.vmem_to_hbm [thread:$0]  %s119_s0, 256, %s121_s23, [#allocation6], %s237_s18, %s237_s18, %s238_s19  }
  0x25   :  { %233 = dma.done.wait [#allocation6], 256  }
  0x26   :  { %234 = vsyncadd [#allocation6], 4294967040 }
  0x27   :  { %131 = vsyncpa [#allocation5], 1 }
  0x28   :  { %132 = vsyncpa [#allocation6], 1 }

</bundles_post_ra>
